<compile_context>
chip_gen: v6e
topology: v6e:2x2x1
jax: 0.10.0
libtpu: 0.0.40
codegen_flags: <defaults>
</compile_context>

<pallas_src>
import jax
import jax.numpy as jnp
from jax.experimental import pallas as pl
from jax.experimental.pallas import tpu as pltpu

TB_MAX = 1024    # max batch tile (rows per grid step)
LANE_PAD = 128   # lane-dense width for the hidden dim


def dqn_kernel(x_ref, w1_ref, b1_ref, w2_ref, b2_ref, w3_ref, b3_ref, out_ref):
    # fc1 + relu
    x = x_ref[...]
    h1 = jnp.dot(x, w1_ref[...], preferred_element_type=jnp.float32) + b1_ref[...]
    h1 = jnp.maximum(h1, 0.0)
    # fc2 + relu
    h2 = jnp.dot(h1, w2_ref[...], preferred_element_type=jnp.float32) + b2_ref[...]
    h2 = jnp.maximum(h2, 0.0)
    # fc3 (no activation) -- narrow (action_size-wide) output, written directly.
    out_ref[...] = jnp.dot(h2, w3_ref[...], preferred_element_type=jnp.float32) + b3_ref[...]


def _round_up(n, m):
    return ((n + m - 1) // m) * m


def _pad2(a, rows, cols):
    """Zero-pad a 2-D array up to (rows, cols)."""
    r, c = a.shape
    return jnp.pad(a, ((0, rows - r), (0, cols - c)))


def prepare_params(params):
    """One-time padding of parameters to lane-dense shapes (call once, reuse).

    Hidden dim is padded to 128 lanes; the output (action) dim is left at its
    real width so the kernel's HBM writeback stays narrow.  Zero padding keeps
    valid outputs bit-identical (relu(0 + 0) = 0, padded weight rows are 0).
    """
    w1, b1, w2, b2, w3, b3 = (params[k] for k in ("w1", "b1", "w2", "b2", "w3", "b3"))
    S = w1.shape[0]
    A = w3.shape[1]
    HP = LANE_PAD
    return dict(
        w1=_pad2(w1, S, HP), b1=_pad2(b1, 1, HP),
        w2=_pad2(w2, HP, HP), b2=_pad2(b2, 1, HP),
        w3=_pad2(w3, HP, A), b3=_pad2(b3, 1, A),
        state_size=S, action_size=A, hidden_size=w1.shape[1],
    )


def dqn_forward(x, padded):
    """x: (B, state_size) f32.  padded: output of prepare_params (reused across calls)."""
    w1p, b1p, w2p, b2p, w3p, b3p = (padded[k] for k in ("w1", "b1", "w2", "b2", "w3", "b3"))
    B, S = x.shape
    A = padded["action_size"]
    H = padded["hidden_size"]

    # Adaptive batch tile: big enough to amortize per-step pipeline overhead,
    # capped near B//2 so v7x keeps >=2 parallel grid steps, floored at 8
    # (sublane alignment) for tiny batches.
    tb = max(8, min(TB_MAX, _round_up(max(B // 2, 1), 8)))
    grid = (pl.cdiv(B, tb),)   # ragged last block handled by Pallas store-masking

    flops = 2 * B * (S * H + H * H + H * A)
    bytes_accessed = 4 * (B * S + B * A
                          + w1p.size + b1p.size + w2p.size + b2p.size
                          + w3p.size + b3p.size)

    const = lambda a: pl.BlockSpec(a.shape, lambda i: (0, 0))  # VMEM-resident, DMA'd once
    out = pl.pallas_call(
        dqn_kernel,
        out_shape=jax.ShapeDtypeStruct((B, A), jnp.float32),
        grid=grid,
        in_specs=[
            pl.BlockSpec((tb, S), lambda i: (i, 0)),   # x: tiled over batch
            const(w1p), const(b1p),
            const(w2p), const(b2p),
            const(w3p), const(b3p),
        ],
        out_specs=pl.BlockSpec((tb, A), lambda i: (i, 0)),
        compiler_params=pltpu.CompilerParams(
            dimension_semantics=("parallel",),
        ),
        cost_estimate=pl.CostEstimate(
            flops=flops, transcendentals=0, bytes_accessed=bytes_accessed),
    )(x, w1p, b1p, w2p, b2p, w3p, b3p)
    return out


def init_params(key, state_size, action_size, hidden_size=64):
    """Deterministic init mimicking torch.nn.Linear's U(-1/sqrt(fan_in), 1/sqrt(fan_in))."""
    ks = jax.random.split(key, 6)

    def linear(kw, kb, fan_in, fan_out):
        bound = 1.0 / jnp.sqrt(jnp.float32(fan_in))
        w = jax.random.uniform(kw, (fan_in, fan_out), jnp.float32, -bound, bound)
        b = jax.random.uniform(kb, (1, fan_out), jnp.float32, -bound, bound)
        return w, b

    w1, b1 = linear(ks[0], ks[1], state_size, hidden_size)
    w2, b2 = linear(ks[2], ks[3], hidden_size, hidden_size)
    w3, b3 = linear(ks[4], ks[5], hidden_size, action_size)
    return dict(w1=w1, b1=b1, w2=w2, b2=b2, w3=w3, b3=b3)


if __name__ == "__main__":
    # LunarLander-v2: observation dim = 8, action dim = 4.
    state_size, action_size, hidden_size, batch = 8, 4, 64, 2

    key = jax.random.PRNGKey(0)
    k_x, k_p = jax.random.split(key)
    x = jax.random.normal(k_x, (batch, state_size), jnp.float32)
    params = init_params(k_p, state_size, action_size, hidden_size)

    # One-time parameter preparation (hoisted out of the hot forward path).
    padded = prepare_params(params)
    padded = jax.tree_util.tree_map(
        lambda a: jax.block_until_ready(a) if isinstance(a, jax.Array) else a, padded)

    out = dqn_forward(x, padded)
    out = jax.block_until_ready(out)

    # Pure-JAX reference check (same math as the PyTorch forward, unpadded params).
    h1 = jnp.maximum(x @ params["w1"] + params["b1"], 0.0)
    h2 = jnp.maximum(h1 @ params["w2"] + params["b2"], 0.0)
    ref = h2 @ params["w3"] + params["b3"]
    assert out.shape == (batch, action_size)
    assert jnp.allclose(out, ref, atol=1e-5, rtol=1e-5)

    # Also exercise a larger, ragged batch (multi-step grid, masked last block).
    big_B = 300
    xb = jax.random.normal(jax.random.PRNGKey(1), (big_B, state_size), jnp.float32)
    outb = jax.block_until_ready(dqn_forward(xb, padded))
    h1b = jnp.maximum(xb @ params["w1"] + params["b1"], 0.0)
    h2b = jnp.maximum(h1b @ params["w2"] + params["b2"], 0.0)
    refb = h2b @ params["w3"] + params["b3"]
    assert outb.shape == (big_B, action_size)
    assert jnp.allclose(outb, refb, atol=1e-5, rtol=1e-5)

    print("KERNEL_OK")
</pallas_src>

<mosaic_0001>
module attributes {stable_mosaic.version = 11 : i64} {
  func.func @dqn_kernel(%arg0: i32, %arg1: memref<8x8xf32, #tpu.memory_space<vmem>>, %arg2: memref<8x128xf32, #tpu.memory_space<vmem>>, %arg3: memref<1x128xf32, #tpu.memory_space<vmem>>, %arg4: memref<128x128xf32, #tpu.memory_space<vmem>>, %arg5: memref<1x128xf32, #tpu.memory_space<vmem>>, %arg6: memref<128x4xf32, #tpu.memory_space<vmem>>, %arg7: memref<1x4xf32, #tpu.memory_space<vmem>>, %arg8: memref<8x4xf32, #tpu.memory_space<vmem>>) attributes {dimension_semantics = [#tpu.dimension_semantics<parallel>], iteration_bounds = array<i64: 1>, scalar_prefetch = 0 : i64, scratch_operands = 0 : i64, tpu.core_type = #tpu.core_type<tc>, window_params = [{transform_indices = @transform_0, window_bounds = array<i64: 8, 8>}, {pipeline_mode = #tpu.pipeline_mode<synchronous>, transform_indices = @transform_1, window_bounds = array<i64: 8, 128>}, {pipeline_mode = #tpu.pipeline_mode<synchronous>, transform_indices = @transform_2, window_bounds = array<i64: 1, 128>}, {pipeline_mode = #tpu.pipeline_mode<synchronous>, transform_indices = @transform_3, window_bounds = array<i64: 128, 128>}, {pipeline_mode = #tpu.pipeline_mode<synchronous>, transform_indices = @transform_4, window_bounds = array<i64: 1, 128>}, {pipeline_mode = #tpu.pipeline_mode<synchronous>, transform_indices = @transform_5, window_bounds = array<i64: 128, 4>}, {pipeline_mode = #tpu.pipeline_mode<synchronous>, transform_indices = @transform_6, window_bounds = array<i64: 1, 4>}, {transform_indices = @transform_7, window_bounds = array<i64: 8, 4>}]} {
    %c0 = arith.constant 0 : index
    %c0_0 = arith.constant 0 : index
    %0 = vector.load %arg1[%c0, %c0_0] : memref<8x8xf32, #tpu.memory_space<vmem>>, vector<8x8xf32>
    %c0_1 = arith.constant 0 : index
    %c0_2 = arith.constant 0 : index
    %1 = vector.load %arg2[%c0_1, %c0_2] : memref<8x128xf32, #tpu.memory_space<vmem>>, vector<8x128xf32>
    %cst = arith.constant dense<0.000000e+00> : vector<8x128xf32>
    %2 = tpu.matmul %0, %1, %cst {dimension_numbers = #tpu.dot_dimension_numbers<[1], [0], [0], [1], [0, 0, 1, 1], [], []>} : vector<8x8xf32>, vector<8x128xf32>, vector<8x128xf32> -> vector<8x128xf32>
    %c0_3 = arith.constant 0 : index
    %c0_4 = arith.constant 0 : index
    %3 = vector.load %arg3[%c0_3, %c0_4] : memref<1x128xf32, #tpu.memory_space<vmem>>, vector<1x128xf32>
    %4 = vector.broadcast %3 : vector<1x128xf32> to vector<8x128xf32>
    %5 = arith.addf %2, %4 : vector<8x128xf32>
    %cst_5 = arith.constant 0.000000e+00 : f32
    %6 = vector.broadcast %cst_5 : f32 to vector<8x128xf32>
    %7 = arith.maximumf %5, %6 : vector<8x128xf32>
    %c0_6 = arith.constant 0 : index
    %c0_7 = arith.constant 0 : index
    %8 = vector.load %arg4[%c0_6, %c0_7] : memref<128x128xf32, #tpu.memory_space<vmem>>, vector<128x128xf32>
    %cst_8 = arith.constant dense<0.000000e+00> : vector<8x128xf32>
    %9 = tpu.matmul %7, %8, %cst_8 {dimension_numbers = #tpu.dot_dimension_numbers<[1], [0], [0], [1], [0, 0, 1, 1], [], []>} : vector<8x128xf32>, vector<128x128xf32>, vector<8x128xf32> -> vector<8x128xf32>
    %c0_9 = arith.constant 0 : index
    %c0_10 = arith.constant 0 : index
    %10 = vector.load %arg5[%c0_9, %c0_10] : memref<1x128xf32, #tpu.memory_space<vmem>>, vector<1x128xf32>
    %11 = vector.broadcast %10 : vector<1x128xf32> to vector<8x128xf32>
    %12 = arith.addf %9, %11 : vector<8x128xf32>
    %cst_11 = arith.constant 0.000000e+00 : f32
    %13 = vector.broadcast %cst_11 : f32 to vector<8x128xf32>
    %14 = arith.maximumf %12, %13 : vector<8x128xf32>
    %c0_12 = arith.constant 0 : index
    %c0_13 = arith.constant 0 : index
    %15 = vector.load %arg6[%c0_12, %c0_13] : memref<128x4xf32, #tpu.memory_space<vmem>>, vector<128x4xf32>
    %cst_14 = arith.constant dense<0.000000e+00> : vector<8x4xf32>
    %16 = tpu.matmul %14, %15, %cst_14 {dimension_numbers = #tpu.dot_dimension_numbers<[1], [0], [0], [1], [0, 0, 1, 1], [], []>} : vector<8x128xf32>, vector<128x4xf32>, vector<8x4xf32> -> vector<8x4xf32>
    %c0_15 = arith.constant 0 : index
    %c0_16 = arith.constant 0 : index
    %17 = vector.load %arg7[%c0_15, %c0_16] : memref<1x4xf32, #tpu.memory_space<vmem>>, vector<1x4xf32>
    %18 = vector.broadcast %17 : vector<1x4xf32> to vector<8x4xf32>
    %19 = arith.addf %16, %18 : vector<8x4xf32>
    %c0_17 = arith.constant 0 : index
    %c0_18 = arith.constant 0 : index
    %20 = vector.load %arg8[%c0_17, %c0_18] : memref<8x4xf32, #tpu.memory_space<vmem>>, vector<8x4xf32>
    tpu.vector_store %arg8[%c0_17, %c0_18], %19 {strides = array<i32>} : memref<8x4xf32, #tpu.memory_space<vmem>>, vector<8x4xf32>,
    return
  }
  func.func @transform_0(%arg0: i32) -> (i32, i32) {
    %c0_i32 = arith.constant 0 : i32
    %c0_i32_0 = arith.constant 0 : i32
    return %arg0, %c0_i32 : i32, i32
  }
  func.func @transform_1(%arg0: i32) -> (i32, i32) {
    %c0_i32 = arith.constant 0 : i32
    %c0_i32_0 = arith.constant 0 : i32
    %c0_i32_1 = arith.constant 0 : i32
    return %c0_i32, %c0_i32_0 : i32, i32
  }
  func.func @transform_2(%arg0: i32) -> (i32, i32) {
    %c0_i32 = arith.constant 0 : i32
    %c0_i32_0 = arith.constant 0 : i32
    %c0_i32_1 = arith.constant 0 : i32
    return %c0_i32, %c0_i32_0 : i32, i32
  }
  func.func @transform_3(%arg0: i32) -> (i32, i32) {
    %c0_i32 = arith.constant 0 : i32
    %c0_i32_0 = arith.constant 0 : i32
    %c0_i32_1 = arith.constant 0 : i32
    return %c0_i32, %c0_i32_0 : i32, i32
  }
  func.func @transform_4(%arg0: i32) -> (i32, i32) {
    %c0_i32 = arith.constant 0 : i32
    %c0_i32_0 = arith.constant 0 : i32
    %c0_i32_1 = arith.constant 0 : i32
    return %c0_i32, %c0_i32_0 : i32, i32
  }
  func.func @transform_5(%arg0: i32) -> (i32, i32) {
    %c0_i32 = arith.constant 0 : i32
    %c0_i32_0 = arith.constant 0 : i32
    %c0_i32_1 = arith.constant 0 : i32
    return %c0_i32, %c0_i32_0 : i32, i32
  }
  func.func @transform_6(%arg0: i32) -> (i32, i32) {
    %c0_i32 = arith.constant 0 : i32
    %c0_i32_0 = arith.constant 0 : i32
    %c0_i32_1 = arith.constant 0 : i32
    return %c0_i32, %c0_i32_0 : i32, i32
  }
  func.func @transform_7(%arg0: i32) -> (i32, i32) {
    %c0_i32 = arith.constant 0 : i32
    %c0_i32_0 = arith.constant 0 : i32
    return %arg0, %c0_i32 : i32, i32
  }
}

</mosaic_0001>

<bundles_post_ra>
// kernel: tpu_custom_call.1
= control target key start
LH: loop header
LB: loop body
LE: loop exit
PB: predicated region body
PF: predicated region fallthrough
CT: control target
= control target key end

     0   :  { %12 = vsyncpa [#allocation3], 0  ;;  %s738_s0 = inlined_call_operand.hbm [shape: f32[2,8], index: 0, kind: input, shape index: {}]   ;;  %s739_s1 = inlined_call_operand.vmem [shape: f32[8,128], index: 1, kind: input, shape index: {}]   ;;  %s740_s2 = inlined_call_operand.vmem [shape: f32[1,128], index: 2, kind: input, shape index: {}]   ;;  %s741_s3 = inlined_call_operand.vmem [shape: f32[128,128], index: 3, kind: input, shape index: {}]   ;;  %s742_s4 = inlined_call_operand.hbm [shape: f32[1,128], index: 4, kind: input, shape index: {}]   ;;  %s743_s5 = inlined_call_operand.vmem [shape: f32[128,4], index: 5, kind: input, shape index: {}]   ;;  %s744_s6 = inlined_call_operand.vmem [shape: f32[1,4], index: 6, kind: input, shape index: {}]   ;;  %s745_s7 = inlined_call_operand.hbm [shape: f32[2,4], index: 7, kind: output, shape index: {}]  }
   0x1   :  { %13 = vsyncpa [#allocation6], 0 }
   0x2   :  { %14 = vsyncpa [#allocation4], 0 }
   0x3   :  { %19 = vsyncadd [#allocation3], 96  ;;  %s532_s24 = smov [#allocation2]  }
   0x4   :  { %s20_s25 = sshll.u32 %s532_s24, 4  ;;  %s21_s25 = int_to_ptr.vmem [resolvable:$true] %s20_s25 }
   0x5   :  { %s474_s26 = scalar_lea.vmem %s21_s25, 32  ;;  %s478_s27 = scalar_lea.vmem %s21_s25, 128 }
   0x6   :  { %p475_p0 = scmp.ne.s32.totalorder %s21_s25, %s474_s26  ;;  %p479_p1 = scmp.lt.s32.totalorder %s21_s25, %s21_s25 }
   0x7   :  { %p480_p2 = scmp.lt.s32.totalorder %s478_s27, %s474_s26 }
   0x9   :  { %p481_p3 = por %p480_p2, %p479_p1 }
   0xb   :  { %p482_p4 = pnand %p481_p3, %p475_p0 }
   0xd   :  { %485 = shalt.err (!%p482_p4)
}
   0xe   :  { %s533_s28 = smov 32   ;;  %s534_s29 = smov 2  }
   0xf   :  { %26 = dma.hbm_to_vmem [thread:$0]  %s738_s0, 32, %s21_s25, [#allocation3], %s533_s28, %s533_s28, %s534_s29  }
  0x10   :  { %s535_s9 = smov [#allocation5]  }
  0x11   :  { %s39_s10 = sshll.u32 %s535_s9, 4  ;;  %s40_s10 = int_to_ptr.vmem [resolvable:$true] %s39_s10 }
  0x12   :  { %s494_s11 = scalar_lea.vmem %s40_s10, 16  ;;  %s498_s12 = scalar_lea.vmem %s40_s10, 32 }
  0x13   :  { %p495_p5 = scmp.ne.s32.totalorder %s40_s10, %s494_s11  ;;  %p499_p6 = scmp.lt.s32.totalorder %s40_s10, %s40_s10 }
  0x14   :  { %p500_p7 = scmp.lt.s32.totalorder %s498_s12, %s494_s11 }
  0x16   :  { %p501_p8 = por %p500_p7, %p499_p6 }
  0x18   :  { %p502_p9 = pnand %p501_p8, %p495_p5 }
  0x1a   :  { %505 = shalt.err (!%p502_p9)
}
  0x1b   :  { %42 = dma.hbm_to_vmem [thread:$0]  %s742_s4, 16, %s40_s10, [#allocation6]  }
  0x1c   :  { %526 = dma.done.wait [#allocation3], 128  }
  0x1d   :  { %527 = vsyncadd [#allocation3], 4294967168 }
  0x1e   :  { %528 = dma.done.wait [#allocation6], 16  }
  0x1f   :  { %529 = vsyncadd [#allocation6], 4294967280  ;;  %v536_v0 = vmov 0.0   ;;  %vm537_vm0 = vmmov 0   ;;  %vm62_vm1 = vcmask 64512   ;;  %v54_v1 = vld [vmem:[%s739_s1] sm:$0xff] }
  0x20   :  { %384 = vmatprep.subr.mxu0 %v536_v0  ;;  %386 = vmatprep.mubr.msk.f32.mxu0 %vm537_vm0, %v536_v0  ;;  %v53_v2 = vld [vmem:[#allocation2] sm:$0xff]  ;;  %v152_v3 = vld [vmem:[%s741_s3 + $0x78] sm:$0xff]  ;;  %v151_v4 = vld [vmem:[%s741_s3 + $0x70] sm:$0xff]  ;;  %vm324_vm2 = vcmask 31744  }
  0x21   :  { %389 = vmatprep.subr.mxu1 %v536_v0  ;;  %421 = vmatprep.mubr.msk.f32.mxu1 %vm537_vm0, %v536_v0  ;;  %v150_v5 = vld [vmem:[%s741_s3 + $0x68] sm:$0xff]  ;;  %v149_v6 = vld [vmem:[%s741_s3 + $0x60] sm:$0xff]  ;;  %v148_v7 = vld [vmem:[%s741_s3 + $0x58] sm:$0xff] }
  0x22   :  { %385 = vmatpush3.msra.mxu0 %v54_v1  ;;  %390 = vmatpush3.msra.mxu1 %v152_v3  ;;  %v147_v8 = vld [vmem:[%s741_s3 + $0x50] sm:$0xff]  ;;  %v146_v9 = vld [vmem:[%s741_s3 + $0x48] sm:$0xff]  ;;  %v145_v10 = vld [vmem:[%s741_s3 + $0x40] sm:$0xff] }
  0x23   :  { %387 = vmatmul.mubr.msk.f32.vlgmr.msra.gmra.mxu0 %vm62_vm1, %v53_v2  ;;  %391 = vmatprep.subr.mxu1 %v536_v0  ;;  %v144_v11 = vld [vmem:[%s741_s3 + $0x38] sm:$0xff]  ;;  %v143_v12 = vld [vmem:[%s741_s3 + $0x30] sm:$0xff]  ;;  %v142_v13 = vld [vmem:[%s741_s3 + $0x28] sm:$0xff] }
  0x24   :  { %392 = vmatpush3.msra.mxu1 %v151_v4  ;;  %424 = vmatprep.subr.mxu0 %v536_v0  ;;  %v141_v14 = vld [vmem:[%s741_s3 + $0x20] sm:$0xff]  ;;  %v140_v15 = vld [vmem:[%s741_s3 + $0x18] sm:$0xff]  ;;  %v139_v16 = vld [vmem:[%s741_s3 + $0x10] sm:$0xff] }
  0x25   :  { %393 = vmatprep.subr.mxu1 %v536_v0  ;;  %456 = vmatprep.mubr.msk.f32.mxu0 %vm537_vm0, %v536_v0  ;;  %v138_v17 = vld [vmem:[%s741_s3 + $0x8] sm:$0xff]  ;;  %v137_v18 = vld [vmem:[%s741_s3] sm:$0xff]  ;;  %v246_v19 = vld [vmem:[%s743_s5 + $0x78] sm:$0xff] }
  0x26   :  { %394 = vmatpush3.msra.mxu1 %v150_v5  ;;  %v245_v20 = vld [vmem:[%s743_s5 + $0x70] sm:$0xff]  ;;  %425 = vmatpush3.msra.mxu0 %v246_v19  ;;  %v244_v21 = vld [vmem:[%s743_s5 + $0x68] sm:$0xff]  ;;  %v243_v22 = vld [vmem:[%s743_s5 + $0x60] sm:$0xff] }
  0x27   :  { %395 = vmatprep.subr.mxu1 %v536_v0  ;;  %426 = vmatprep.subr.mxu0 %v536_v0  ;;  %v242_v23 = vld [vmem:[%s743_s5 + $0x58] sm:$0xff]  ;;  %v241_v24 = vld [vmem:[%s743_s5 + $0x50] sm:$0xff]  ;;  %v240_v25 = vld [vmem:[%s743_s5 + $0x48] sm:$0xff] }
  0x28   :  { %396 = vmatpush3.msra.mxu1 %v149_v6  ;;  %427 = vmatpush3.msra.mxu0 %v245_v20  ;;  %v239_v26 = vld [vmem:[%s743_s5 + $0x40] sm:$0xff]  ;;  %v238_v27 = vld [vmem:[%s743_s5 + $0x38] sm:$0xff]  ;;  %v237_v28 = vld [vmem:[%s743_s5 + $0x30] sm:$0xff] }
  0x29   :  { %397 = vmatprep.subr.mxu1 %v536_v0  ;;  %428 = vmatprep.subr.mxu0 %v536_v0  ;;  %v236_v29 = vld [vmem:[%s743_s5 + $0x28] sm:$0xff]  ;;  %v235_v30 = vld [vmem:[%s743_s5 + $0x20] sm:$0xff]  ;;  %v234_v31 = vld [vmem:[%s743_s5 + $0x18] sm:$0xff] }
  0x2a   :  { %398 = vmatpush3.msra.mxu1 %v148_v7  ;;  %429 = vmatpush3.msra.mxu0 %v244_v21  ;;  %v344_v32 = vld [vmem:[%s740_s2] ss:$0 sm:$0xff]  ;;  %v233_v37 = vld [vmem:[%s743_s5 + $0x10] sm:$0xff]  ;;  %v232_v38 = vld [vmem:[%s743_s5 + $0x8] sm:$0xff] }
  0x2b   :  { %399 = vmatprep.subr.mxu1 %v536_v0  ;;  %430 = vmatprep.subr.mxu0 %v536_v0  ;;  %v231_v39 = vld [vmem:[%s743_s5] sm:$0xff]  ;;  %v346_v40 = vld [vmem:[#allocation5] ss:$0 sm:$0xff] }
  0x2c   :  { %400 = vmatpush3.msra.mxu1 %v147_v8  ;;  %431 = vmatpush3.msra.mxu0 %v243_v22  ;;  %v347_v45 = vld [vmem:[%s744_s6] ss:$0 sm:$0xff] }
  0x2d   :  { %401 = vmatprep.subr.mxu1 %v536_v0  ;;  %432 = vmatprep.subr.mxu0 %v536_v0 }
  0x2e   :  { %402 = vmatpush3.msra.mxu1 %v146_v9  ;;  %433 = vmatpush3.msra.mxu0 %v242_v23 }
  0x2f   :  { %403 = vmatprep.subr.mxu1 %v536_v0  ;;  %434 = vmatprep.subr.mxu0 %v536_v0 }
  0x30   :  { %404 = vmatpush3.msra.mxu1 %v145_v10  ;;  %435 = vmatpush3.msra.mxu0 %v241_v24 }
  0x31   :  { %405 = vmatprep.subr.mxu1 %v536_v0  ;;  %436 = vmatprep.subr.mxu0 %v536_v0 }
  0x32   :  { %406 = vmatpush3.msra.mxu1 %v144_v11  ;;  %437 = vmatpush3.msra.mxu0 %v240_v25 }
  0x33   :  { %407 = vmatprep.subr.mxu1 %v536_v0  ;;  %438 = vmatprep.subr.mxu0 %v536_v0 }
  0x34   :  { %408 = vmatpush3.msra.mxu1 %v143_v12  ;;  %439 = vmatpush3.msra.mxu0 %v239_v26 }
  0x35   :  { %409 = vmatprep.subr.mxu1 %v536_v0  ;;  %440 = vmatprep.subr.mxu0 %v536_v0 }
  0x36   :  { %410 = vmatpush3.msra.mxu1 %v142_v13  ;;  %441 = vmatpush3.msra.mxu0 %v238_v27 }
  0x37   :  { %411 = vmatprep.subr.mxu1 %v536_v0  ;;  %442 = vmatprep.subr.mxu0 %v536_v0 }
  0x38   :  { %412 = vmatpush3.msra.mxu1 %v141_v14  ;;  %443 = vmatpush3.msra.mxu0 %v237_v28 }
  0x39   :  { %413 = vmatprep.subr.mxu1 %v536_v0  ;;  %444 = vmatprep.subr.mxu0 %v536_v0 }
  0x3a   :  { %414 = vmatpush3.msra.mxu1 %v140_v15  ;;  %445 = vmatpush3.msra.mxu0 %v236_v29 }
  0x3b   :  { %415 = vmatprep.subr.mxu1 %v536_v0  ;;  %446 = vmatprep.subr.mxu0 %v536_v0 }
  0x3c   :  { %416 = vmatpush3.msra.mxu1 %v139_v16  ;;  %447 = vmatpush3.msra.mxu0 %v235_v30 }
  0x3d   :  { %417 = vmatprep.subr.mxu1 %v536_v0  ;;  %448 = vmatprep.subr.mxu0 %v536_v0 }
  0x3e   :  { %418 = vmatpush3.msra.mxu1 %v138_v17  ;;  %449 = vmatpush3.msra.mxu0 %v234_v31 }
  0x3f   :  { %419 = vmatprep.subr.mxu1 %v536_v0  ;;  %450 = vmatprep.subr.mxu0 %v536_v0 }
  0x40   :  { %420 = vmatpush3.msra.mxu1 %v137_v18  ;;  %451 = vmatpush3.msra.mxu0 %v233_v37 }
  0x41   :  { %452 = vmatprep.subr.mxu0 %v536_v0 }
  0x42   :  { %453 = vmatpush3.msra.mxu0 %v232_v38 }
  0x43   :  { %454 = vmatprep.subr.mxu0 %v536_v0 }
  0x44   :  { %455 = vmatpush3.msra.mxu0 %v231_v39 }
  0xe3   :  { %v132_v33 = vpop.f32.mrf.mxu0 }
  0xe4   :  { %v133_v34 = vadd.f32 %v344_v32, %v132_v33 }
  0xe5   :  { %v388_v35 = vpop.f32.mrf.mxu0 }
  0xe6   :  { %v136_v36 = vmax.f32 %v133_v34, 0.0 }
  0xe8   :  { %422 = vmatmul.mubr.f32.vlgmr.msra.gmra.mxu1 %v136_v36 }
 0x1a8   :  { %v226_v41 = vpop.f32.mrf.mxu1 }
 0x1a9   :  { %v227_v42 = vadd.f32 %v346_v40, %v226_v41 }
 0x1aa   :  { %v423_v43 = vpop.f32.mrf.mxu1 }
 0x1ab   :  { %v230_v44 = vmax.f32 %v227_v42, 0.0 }
 0x1ad   :  { %457 = vmatmul.mubr.f32.vlgmr.msra.gmra.mxu0 %v230_v44 }
 0x26d   :  { %v320_v46 = vpop.f32.mrf.mxu0 }
 0x26e   :  { %v321_v47 = vadd.f32 %v347_v45, %v320_v46 }
 0x26f   :  { %v458_v48 = vpop.f32.mrf.mxu0 }
 0x270   :  { %325 = vst.msk [vmem:[#allocation7] sm:$0xff] %vm324_vm2, %v321_v47 }
 0x271   :  { %330 = vsyncadd [#allocation4], 96  ;;  %s538_s10 = smov [#allocation7]  }
 0x272   :  { %s331_s11 = sshll.u32 %s538_s10, 4  ;;  %s332_s11 = int_to_ptr.vmem [resolvable:$true] %s331_s11 }
 0x273   :  { %s506_s5 = scalar_lea.vmem %s332_s11, 32  ;;  %s510_s12 = scalar_lea.vmem %s332_s11, 128 }
 0x274   :  { %p507_p10 = scmp.ne.s32.totalorder %s332_s11, %s506_s5  ;;  %p511_p11 = scmp.lt.s32.totalorder %s332_s11, %s332_s11 }
 0x275   :  { %p512_p12 = scmp.lt.s32.totalorder %s510_s12, %s506_s5 }
 0x277   :  { %p513_p13 = por %p512_p12, %p511_p11 }
 0x279   :  { %p514_p0 = pnand %p513_p13, %p507_p10 }
 0x27b   :  { %517 = shalt.err (!%p514_p0)
}
 0x27c   :  { %337 = dma.vmem_to_hbm [thread:$0]  %s332_s11, 32, %s745_s7, [#allocation4], %s533_s28, %s533_s28, %s534_s29  }
 0x27d   :  { %530 = dma.done.wait [#allocation4], 128  }
 0x27e   :  { %531 = vsyncadd [#allocation4], 4294967168 }
 0x27f   :  { %341 = vsyncpa [#allocation3], 1 }
 0x280   :  { %342 = vsyncpa [#allocation6], 1 }
 0x281   :  { %343 = vsyncpa [#allocation4], 1 }

</bundles_post_ra>
